<compile_context>
chip_gen: v7x
topology: tpu7x:2x2x1
jax: 0.10.0
libtpu: 0.0.40
codegen_flags: <defaults>
</compile_context>

<pallas_src>
import math
import functools

import numpy as np
import jax
import jax.numpy as jnp
from jax.experimental import pallas as pl
from jax.experimental.pallas import tpu as pltpu

# ----------------------------- model hyper-params -----------------------------
KERNELS = (1, 2, 3, 4, 5, 6)        # conv kernel widths (module default)
OUT_CHANNELS = 4                    # out_channels per unit kernel width (small demo)
C_VOCAB = 50                        # char vocab size
C_EMB = 16                          # char embedding dim (E)
MAX_WORD_LEN = 7                    # W
BATCH = 2
SEQ = 16
CNN_OUT = OUT_CHANNELS * sum(KERNELS)   # D = 4 * 21 = 84
D_PAD = 128                         # lane-dense padded feature width
K_PAD = 128                         # lane-dense padded im2col LHS width (W*E=112 -> 128)
BN_EPS = 1e-5
MASK_BIAS = -1e4                    # bf16-representable; tanh(-1e4) == -1.0 exactly in f32


# --------------------------------- kernels -------------------------------------
def conv_maxpool_kernel(lhs_ref, cw_ref, feat_ref, *, word_len, d_pad):
    """Fused char-CNN: one bf16 im2col matmul + tanh + max-pool over positions.

    Bias and invalid-position mask are folded into the weight slab (constant-1 LHS lane),
    so the only elementwise work after the MXU is one tanh and (word_len-1) vmax ops.
    """
    y = jnp.dot(lhs_ref[...], cw_ref[...],
                preferred_element_type=jnp.float32)          # (TN, W*128) f32 accum
    a = jnp.tanh(y)                                          # f32 elementwise (v5e-safe)
    x = a[:, :d_pad]
    for t in range(1, word_len):                             # 128-aligned lane-tile slices
        x = jnp.maximum(x, a[:, t * d_pad:(t + 1) * d_pad])  # (TN, 128)
    feat_ref[...] = x


def bn_highway_fc_kernel(feat_ref, mu_ref, rstd_ref,
                         h1w_ref, h1b_ref, h2w_ref, h2b_ref,
                         fcw_ref, fcb_ref, out_ref, *, d_pad):
    # BatchNorm1d(D, affine=False) with global (training-mode) batch stats passed in.
    x = (feat_ref[...] - mu_ref[...]) * rstd_ref[...]

    # Highway, 2 layers; each is one bf16 (128 -> 256) matmul, 128-aligned proj/gate split.
    for w_ref, b_ref in ((h1w_ref, h1b_ref), (h2w_ref, h2b_ref)):
        h = jnp.dot(x.astype(jnp.bfloat16), w_ref[...],
                    preferred_element_type=jnp.float32) + b_ref[...]
        proj = jnp.maximum(h[:, :d_pad], 0.0)
        gate = jax.nn.sigmoid(h[:, d_pad:])
        x = proj + gate * (x - proj)          # == gate*x + (1-gate)*proj, one fewer VALU op

    # TODO(synk): nn.Dropout(0.2) is stochastic in train mode; applied as identity (eval).

    # fc: Linear(D, C_EMB); output kept 128-wide so the store is lane-dense & unmasked.
    out_ref[...] = jnp.dot(x.astype(jnp.bfloat16), fcw_ref[...],
                           preferred_element_type=jnp.float32) + fcb_ref[...]


# ------------------------- operand packing (wrapper side) ----------------------
def pack_operands(params):
    """Fuse/pad the raw (PyTorch-layout) params into lane-dense bf16/f32 kernel operands."""
    emb_table, conv_ws, conv_bs, hw_ws, hw_bs, fc_w, fc_b = params
    W, E, D, DP = MAX_WORD_LEN, C_EMB, CNN_OUT, D_PAD
    K_IN = W * E                                        # 112; column 112 is the 1-lane

    offs, o = [], 0
    for kw in KERNELS:
        offs.append(o)
        o += OUT_CHANNELS * kw

    # im2col conv weight slab; row K_IN carries biases (+ -1e4 for invalid positions).
    cw = np.zeros((K_PAD, W * DP), np.float32)
    for ki, kw in enumerate(KERNELS):
        ck = OUT_CHANNELS * kw
        wk = np.asarray(conv_ws[ki]).reshape(ck, kw * E).T     # (kw*E, Ck), rows = (tap, e)
        bk = np.asarray(conv_bs[ki])
        n_pos = W - kw + 1
        for t in range(W):
            c0 = t * DP + offs[ki]
            if t < n_pos:
                cw[t * E:(t + kw) * E, c0:c0 + ck] = wk
                cw[K_IN, c0:c0 + ck] = bk
            else:
                cw[K_IN, c0:c0 + ck] = MASK_BIAS        # tanh saturates to -1 -> excluded by max

    # Highway layers: one (128, 256) bf16 weight per layer (proj cols 0:128, gate 128:256).
    hw_ops = []
    for w, b in zip(hw_ws, hw_bs):                      # w: (2D, D), b: (2D,)
        w = np.asarray(w); b = np.asarray(b)
        wp = np.zeros((DP, 2 * DP), np.float32)
        wp[:D, :D] = w[:D, :].T                         # proj weight (in, out)
        wp[:D, DP:DP + D] = w[D:, :].T                  # gate weight (in, out)
        bp = np.zeros((1, 2 * DP), np.float32)
        bp[0, :D] = b[:D]
        bp[0, DP:DP + D] = b[D:]
        hw_ops += [jnp.asarray(wp, jnp.bfloat16), jnp.asarray(bp, jnp.float32)]

    fcw = np.zeros((DP, DP), np.float32)
    fcw[:D, :C_EMB] = np.asarray(fc_w).T
    fcb = np.zeros((1, DP), np.float32)
    fcb[0, :C_EMB] = np.asarray(fc_b)

    return (emb_table,
            jnp.asarray(cw, jnp.bfloat16),
            *hw_ops,
            jnp.asarray(fcw, jnp.bfloat16),
            jnp.asarray(fcb, jnp.float32))


@functools.partial(jax.jit, static_argnames=("row_tile",))
def char_embedding_forward(x_idx, operands, *, row_tile=None):
    """x_idx: int32 (B, S, W). Returns f32 (B, S, C_EMB)."""
    emb_table, cw, h1w, h1b, h2w, h2b, fcw, fcb = operands
    B, S, W = x_idx.shape
    assert W == MAX_WORD_LEN
    N = B * S
    if row_tile is None:
        row_tile = min(512, N)                  # >=512-row tiles amortize per-step overhead
    assert N % row_tile == 0 and row_tile % 8 == 0
    n_tiles = N // row_tile

    # Embedding gather + im2col flatten + constant-1 bias lane (plain-JAX glue, bf16 LHS).
    # TODO(synk): at scale, move the gather in-kernel (PrefetchScalarGridSpec + one-hot
    # bf16 matmul against the 3.2 KiB table) to drop this extra HBM round trip.
    emb = emb_table[x_idx.reshape(N, W)].reshape(N, W * C_EMB)
    lhs = jnp.concatenate(
        [emb,
         jnp.ones((N, 1), jnp.float32),                       # bias lane (column 112)
         jnp.zeros((N, K_PAD - W * C_EMB - 1), jnp.float32)], # pad to 128 lanes
        axis=1).astype(jnp.bfloat16)

    row_lhs_spec = pl.BlockSpec((row_tile, K_PAD), lambda i: (i, 0))
    row_f32_spec = pl.BlockSpec((row_tile, D_PAD), lambda i: (i, 0))

    def resident(arr):          # weight/stat operands: DMA'd once, resident across tiles
        return pl.BlockSpec(arr.shape, lambda i: (0, 0))

    parallel = pltpu.CompilerParams(dimension_semantics=("parallel",))

    # Pass 1: fused conv + tanh + max-pool -> (N, 128) feature slab.
    feats = pl.pallas_call(
        functools.partial(conv_maxpool_kernel, word_len=W, d_pad=D_PAD),
        out_shape=jax.ShapeDtypeStruct((N, D_PAD), jnp.float32),
        grid=(n_tiles,),
        in_specs=[row_lhs_spec, resident(cw)],
        out_specs=row_f32_spec,
        compiler_params=parallel,
    )(lhs, cw)

    # Global training-mode BatchNorm statistics (two-pass: tiny XLA reduction here keeps
    # the row axis tileable / megacore-parallel while batch stats stay exact).
    mu = jnp.mean(feats, axis=0, keepdims=True)
    var = jnp.mean(jnp.square(feats - mu), axis=0, keepdims=True)
    rstd = jax.lax.rsqrt(var + BN_EPS)

    # Pass 2: BN + 2-layer Highway + fc, weights/stats resident, row tiles streamed.
    out = pl.pallas_call(
        functools.partial(bn_highway_fc_kernel, d_pad=D_PAD),
        out_shape=jax.ShapeDtypeStruct((N, D_PAD), jnp.float32),
        grid=(n_tiles,),
        in_specs=[row_f32_spec,
                  resident(mu), resident(rstd),
                  resident(h1w), resident(h1b),
                  resident(h2w), resident(h2b),
                  resident(fcw), resident(fcb)],
        out_specs=row_f32_spec,
        compiler_params=parallel,
    )(feats, mu, rstd, h1w, h1b, h2w, h2b, fcw, fcb)

    return out[:, :C_EMB].reshape(B, S, C_EMB)


# ----------------------------- pure-JAX reference ------------------------------
def reference_forward(x_idx, params):
    emb_table, conv_ws, conv_bs, hw_ws, hw_bs, fc_w, fc_b = params
    B, S, W = x_idx.shape
    N = B * S
    hi = jax.lax.Precision.HIGHEST
    emb = emb_table[x_idx.reshape(N, W)]                # (N, W, E)

    feats = []
    for kw, w, b in zip(KERNELS, conv_ws, conv_bs):
        ck = w.shape[0]
        wk = w.reshape(ck, kw * C_EMB).T                # (kw*E, Ck)
        f = None
        for t in range(W - kw + 1):
            win = emb[:, t:t + kw, :].reshape(N, kw * C_EMB)
            a = jnp.tanh(jnp.dot(win, wk, precision=hi) + b[None, :])
            f = a if f is None else jnp.maximum(f, a)
        feats.append(f)
    x = jnp.concatenate(feats, axis=1)                  # (N, 84)

    mu = jnp.mean(x, 0, keepdims=True)
    var = jnp.mean((x - mu) ** 2, 0, keepdims=True)
    x = (x - mu) / jnp.sqrt(var + BN_EPS)

    D = x.shape[1]
    for w, b in zip(hw_ws, hw_bs):
        proj = jnp.dot(x, w[:D, :].T, precision=hi) + b[:D]
        gate = jax.nn.sigmoid(jnp.dot(x, w[D:, :].T, precision=hi) + b[D:])
        x = gate * x + (1.0 - gate) * jnp.maximum(proj, 0.0)

    out = jnp.dot(x, fc_w.T, precision=hi) + fc_b
    return out.reshape(B, S, C_EMB)


# ------------------------------- param creation ---------------------------------
def make_params(key):
    keys = jax.random.split(key, 16)
    emb_table = jax.random.normal(keys[0], (C_VOCAB, C_EMB), jnp.float32)

    conv_ws, conv_bs = [], []
    for i, kw in enumerate(KERNELS):
        ck = OUT_CHANNELS * kw
        conv_ws.append(jax.random.uniform(keys[1 + i], (ck, kw, C_EMB), jnp.float32, -0.05, 0.05))
        conv_bs.append(jnp.zeros((ck,), jnp.float32))   # conv bias filled with 0

    D = CNN_OUT
    hw_ws, hw_bs = [], []
    for l in range(2):
        std = math.sqrt(2.0 / (D + 2 * D))              # xavier_normal on (2D, D)
        hw_ws.append(std * jax.random.normal(keys[8 + l], (2 * D, D), jnp.float32))
        hw_bs.append(jnp.concatenate([jnp.zeros((D,), jnp.float32),
                                      jnp.ones((D,), jnp.float32)]))

    fc_w = jax.random.uniform(keys[12], (C_EMB, D), jnp.float32, -0.05, 0.05)
    fc_b = jnp.zeros((C_EMB,), jnp.float32)

    return emb_table, conv_ws, conv_bs, hw_ws, hw_bs, fc_w, fc_b


if __name__ == "__main__":
    key = jax.random.PRNGKey(0)
    k_params, k_x = jax.random.split(key)
    params = make_params(k_params)
    operands = pack_operands(params)

    x_idx = jax.random.randint(k_x, (BATCH, SEQ, MAX_WORD_LEN), 0, C_VOCAB, jnp.int32)

    # row_tile=16 forces a 2-step grid at this demo size to exercise the tiled/parallel
    # path and the two-pass (global) BatchNorm; production default is min(512, N).
    out = jax.block_until_ready(char_embedding_forward(x_idx, operands, row_tile=16))
    ref = jax.block_until_ready(reference_forward(x_idx, params))

    assert out.shape == (BATCH, SEQ, C_EMB), out.shape
    assert bool(jnp.all(jnp.isfinite(out)))
    # bf16 MXU operands (f32 accumulation) + BatchNorm's 1/sigma amplification put the
    # expected delta vs the f32 reference around ~1e-2; a structural bug would be O(1).
    err = float(jnp.max(jnp.abs(out - ref)))
    assert jnp.allclose(out, ref, rtol=5e-2, atol=5e-2), err
    print("KERNEL_OK")
</pallas_src>

<mosaic_0001>
module attributes {stable_mosaic.version = 11 : i64} {
  func.func @conv_maxpool_kernel(%arg0: i32, %arg1: memref<16x128xbf16, #tpu.memory_space<vmem>>, %arg2: memref<128x896xbf16, #tpu.memory_space<vmem>>, %arg3: memref<16x128xf32, #tpu.memory_space<vmem>>) attributes {dimension_semantics = [#tpu.dimension_semantics<parallel>], iteration_bounds = array<i64: 2>, scalar_prefetch = 0 : i64, scratch_operands = 0 : i64, tpu.core_type = #tpu.core_type<tc>, window_params = [{transform_indices = @transform_0, window_bounds = array<i64: 16, 128>}, {pipeline_mode = #tpu.pipeline_mode<synchronous>, transform_indices = @transform_1, window_bounds = array<i64: 128, 896>}, {transform_indices = @transform_2, window_bounds = array<i64: 16, 128>}]} {
    %c0 = arith.constant 0 : index
    %c0_0 = arith.constant 0 : index
    %0 = vector.load %arg1[%c0, %c0_0] : memref<16x128xbf16, #tpu.memory_space<vmem>>, vector<16x128xbf16>
    %c0_1 = arith.constant 0 : index
    %c0_2 = arith.constant 0 : index
    %1 = vector.load %arg2[%c0_1, %c0_2] : memref<128x896xbf16, #tpu.memory_space<vmem>>, vector<128x896xbf16>
    %cst = arith.constant dense<0.000000e+00> : vector<16x896xf32>
    %2 = tpu.matmul %0, %1, %cst {dimension_numbers = #tpu.dot_dimension_numbers<[1], [0], [0], [1], [0, 0, 1, 1], [], []>} : vector<16x128xbf16>, vector<128x896xbf16>, vector<16x896xf32> -> vector<16x896xf32>
    %3 = math.tanh %2 : vector<16x896xf32>
    %4 = vector.extract_strided_slice %3 {offsets = [0, 0], sizes = [16, 128], strides = [1, 1]} : vector<16x896xf32> to vector<16x128xf32>
    %5 = vector.extract_strided_slice %3 {offsets = [0, 128], sizes = [16, 128], strides = [1, 1]} : vector<16x896xf32> to vector<16x128xf32>
    %6 = arith.maximumf %4, %5 : vector<16x128xf32>
    %7 = vector.extract_strided_slice %3 {offsets = [0, 256], sizes = [16, 128], strides = [1, 1]} : vector<16x896xf32> to vector<16x128xf32>
    %8 = arith.maximumf %6, %7 : vector<16x128xf32>
    %9 = vector.extract_strided_slice %3 {offsets = [0, 384], sizes = [16, 128], strides = [1, 1]} : vector<16x896xf32> to vector<16x128xf32>
    %10 = arith.maximumf %8, %9 : vector<16x128xf32>
    %11 = vector.extract_strided_slice %3 {offsets = [0, 512], sizes = [16, 128], strides = [1, 1]} : vector<16x896xf32> to vector<16x128xf32>
    %12 = arith.maximumf %10, %11 : vector<16x128xf32>
    %13 = vector.extract_strided_slice %3 {offsets = [0, 640], sizes = [16, 128], strides = [1, 1]} : vector<16x896xf32> to vector<16x128xf32>
    %14 = arith.maximumf %12, %13 : vector<16x128xf32>
    %15 = vector.extract_strided_slice %3 {offsets = [0, 768], sizes = [16, 128], strides = [1, 1]} : vector<16x896xf32> to vector<16x128xf32>
    %16 = arith.maximumf %14, %15 : vector<16x128xf32>
    %c0_3 = arith.constant 0 : index
    %c0_4 = arith.constant 0 : index
    %17 = vector.load %arg3[%c0_3, %c0_4] : memref<16x128xf32, #tpu.memory_space<vmem>>, vector<16x128xf32>
    tpu.vector_store %arg3[%c0_3, %c0_4], %16 {strides = array<i32>} : memref<16x128xf32, #tpu.memory_space<vmem>>, vector<16x128xf32>,
    return
  }
  func.func @transform_0(%arg0: i32) -> (i32, i32) {
    %c0_i32 = arith.constant 0 : i32
    %c0_i32_0 = arith.constant 0 : i32
    return %arg0, %c0_i32 : i32, i32
  }
  func.func @transform_1(%arg0: i32) -> (i32, i32) {
    %c0_i32 = arith.constant 0 : i32
    %c0_i32_0 = arith.constant 0 : i32
    %c0_i32_1 = arith.constant 0 : i32
    return %c0_i32, %c0_i32_0 : i32, i32
  }
  func.func @transform_2(%arg0: i32) -> (i32, i32) {
    %c0_i32 = arith.constant 0 : i32
    %c0_i32_0 = arith.constant 0 : i32
    return %arg0, %c0_i32 : i32, i32
  }
}

module attributes {stable_mosaic.version = 11 : i64} {
  func.func @bn_highway_fc_kernel(%arg0: i32, %arg1: memref<16x128xf32, #tpu.memory_space<vmem>>, %arg2: memref<1x128xf32, #tpu.memory_space<vmem>>, %arg3: memref<1x128xf32, #tpu.memory_space<vmem>>, %arg4: memref<128x256xbf16, #tpu.memory_space<vmem>>, %arg5: memref<1x256xf32, #tpu.memory_space<vmem>>, %arg6: memref<128x256xbf16, #tpu.memory_space<vmem>>, %arg7: memref<1x256xf32, #tpu.memory_space<vmem>>, %arg8: memref<128x128xbf16, #tpu.memory_space<vmem>>, %arg9: memref<1x128xf32, #tpu.memory_space<vmem>>, %arg10: memref<16x128xf32, #tpu.memory_space<vmem>>) attributes {dimension_semantics = [#tpu.dimension_semantics<parallel>], iteration_bounds = array<i64: 2>, scalar_prefetch = 0 : i64, scratch_operands = 0 : i64, tpu.core_type = #tpu.core_type<tc>, window_params = [{transform_indices = @transform_0, window_bounds = array<i64: 16, 128>}, {pipeline_mode = #tpu.pipeline_mode<synchronous>, transform_indices = @transform_1, window_bounds = array<i64: 1, 128>}, {pipeline_mode = #tpu.pipeline_mode<synchronous>, transform_indices = @transform_2, window_bounds = array<i64: 1, 128>}, {pipeline_mode = #tpu.pipeline_mode<synchronous>, transform_indices = @transform_3, window_bounds = array<i64: 128, 256>}, {pipeline_mode = #tpu.pipeline_mode<synchronous>, transform_indices = @transform_4, window_bounds = array<i64: 1, 256>}, {pipeline_mode = #tpu.pipeline_mode<synchronous>, transform_indices = @transform_5, window_bounds = array<i64: 128, 256>}, {pipeline_mode = #tpu.pipeline_mode<synchronous>, transform_indices = @transform_6, window_bounds = array<i64: 1, 256>}, {pipeline_mode = #tpu.pipeline_mode<synchronous>, transform_indices = @transform_7, window_bounds = array<i64: 128, 128>}, {pipeline_mode = #tpu.pipeline_mode<synchronous>, transform_indices = @transform_8, window_bounds = array<i64: 1, 128>}, {transform_indices = @transform_9, window_bounds = array<i64: 16, 128>}]} {
    %c0 = arith.constant 0 : index
    %c0_0 = arith.constant 0 : index
    %0 = vector.load %arg1[%c0, %c0_0] : memref<16x128xf32, #tpu.memory_space<vmem>>, vector<16x128xf32>
    %c0_1 = arith.constant 0 : index
    %c0_2 = arith.constant 0 : index
    %1 = vector.load %arg2[%c0_1, %c0_2] : memref<1x128xf32, #tpu.memory_space<vmem>>, vector<1x128xf32>
    %2 = vector.broadcast %1 : vector<1x128xf32> to vector<16x128xf32>
    %3 = arith.subf %0, %2 : vector<16x128xf32>
    %c0_3 = arith.constant 0 : index
    %c0_4 = arith.constant 0 : index
    %4 = vector.load %arg3[%c0_3, %c0_4] : memref<1x128xf32, #tpu.memory_space<vmem>>, vector<1x128xf32>
    %5 = vector.broadcast %4 : vector<1x128xf32> to vector<16x128xf32>
    %6 = arith.mulf %3, %5 : vector<16x128xf32>
    %7 = arith.truncf %6 : vector<16x128xf32> to vector<16x128xbf16>
    %c0_5 = arith.constant 0 : index
    %c0_6 = arith.constant 0 : index
    %8 = vector.load %arg4[%c0_5, %c0_6] : memref<128x256xbf16, #tpu.memory_space<vmem>>, vector<128x256xbf16>
    %cst = arith.constant dense<0.000000e+00> : vector<16x256xf32>
    %9 = tpu.matmul %7, %8, %cst {dimension_numbers = #tpu.dot_dimension_numbers<[1], [0], [0], [1], [0, 0, 1, 1], [], []>} : vector<16x128xbf16>, vector<128x256xbf16>, vector<16x256xf32> -> vector<16x256xf32>
    %c0_7 = arith.constant 0 : index
    %c0_8 = arith.constant 0 : index
    %10 = vector.load %arg5[%c0_7, %c0_8] : memref<1x256xf32, #tpu.memory_space<vmem>>, vector<1x256xf32>
    %11 = vector.broadcast %10 : vector<1x256xf32> to vector<16x256xf32>
    %12 = arith.addf %9, %11 : vector<16x256xf32>
    %13 = vector.extract_strided_slice %12 {offsets = [0, 0], sizes = [16, 128], strides = [1, 1]} : vector<16x256xf32> to vector<16x128xf32>
    %cst_9 = arith.constant 0.000000e+00 : f32
    %14 = vector.broadcast %cst_9 : f32 to vector<16x128xf32>
    %15 = arith.maximumf %13, %14 : vector<16x128xf32>
    %16 = vector.extract_strided_slice %12 {offsets = [0, 128], sizes = [16, 128], strides = [1, 1]} : vector<16x256xf32> to vector<16x128xf32>
    %17 = arith.negf %16 : vector<16x128xf32>
    %18 = math.exp %17 : vector<16x128xf32>
    %cst_10 = arith.constant 1.000000e+00 : f32
    %19 = vector.broadcast %cst_10 : f32 to vector<16x128xf32>
    %20 = arith.addf %19, %18 : vector<16x128xf32>
    %21 = arith.divf %19, %20 : vector<16x128xf32>
    %22 = arith.subf %6, %15 : vector<16x128xf32>
    %23 = arith.mulf %21, %22 : vector<16x128xf32>
    %24 = arith.addf %15, %23 : vector<16x128xf32>
    %25 = arith.truncf %24 : vector<16x128xf32> to vector<16x128xbf16>
    %c0_11 = arith.constant 0 : index
    %c0_12 = arith.constant 0 : index
    %26 = vector.load %arg6[%c0_11, %c0_12] : memref<128x256xbf16, #tpu.memory_space<vmem>>, vector<128x256xbf16>
    %cst_13 = arith.constant dense<0.000000e+00> : vector<16x256xf32>
    %27 = tpu.matmul %25, %26, %cst_13 {dimension_numbers = #tpu.dot_dimension_numbers<[1], [0], [0], [1], [0, 0, 1, 1], [], []>} : vector<16x128xbf16>, vector<128x256xbf16>, vector<16x256xf32> -> vector<16x256xf32>
    %c0_14 = arith.constant 0 : index
    %c0_15 = arith.constant 0 : index
    %28 = vector.load %arg7[%c0_14, %c0_15] : memref<1x256xf32, #tpu.memory_space<vmem>>, vector<1x256xf32>
    %29 = vector.broadcast %28 : vector<1x256xf32> to vector<16x256xf32>
    %30 = arith.addf %27, %29 : vector<16x256xf32>
    %31 = vector.extract_strided_slice %30 {offsets = [0, 0], sizes = [16, 128], strides = [1, 1]} : vector<16x256xf32> to vector<16x128xf32>
    %cst_16 = arith.constant 0.000000e+00 : f32
    %32 = vector.broadcast %cst_16 : f32 to vector<16x128xf32>
    %33 = arith.maximumf %31, %32 : vector<16x128xf32>
    %34 = vector.extract_strided_slice %30 {offsets = [0, 128], sizes = [16, 128], strides = [1, 1]} : vector<16x256xf32> to vector<16x128xf32>
    %35 = arith.negf %34 : vector<16x128xf32>
    %36 = math.exp %35 : vector<16x128xf32>
    %cst_17 = arith.constant 1.000000e+00 : f32
    %37 = vector.broadcast %cst_17 : f32 to vector<16x128xf32>
    %38 = arith.addf %37, %36 : vector<16x128xf32>
    %39 = arith.divf %37, %38 : vector<16x128xf32>
    %40 = arith.subf %24, %33 : vector<16x128xf32>
    %41 = arith.mulf %39, %40 : vector<16x128xf32>
    %42 = arith.addf %33, %41 : vector<16x128xf32>
    %43 = arith.truncf %42 : vector<16x128xf32> to vector<16x128xbf16>
    %c0_18 = arith.constant 0 : index
    %c0_19 = arith.constant 0 : index
    %44 = vector.load %arg8[%c0_18, %c0_19] : memref<128x128xbf16, #tpu.memory_space<vmem>>, vector<128x128xbf16>
    %cst_20 = arith.constant dense<0.000000e+00> : vector<16x128xf32>
    %45 = tpu.matmul %43, %44, %cst_20 {dimension_numbers = #tpu.dot_dimension_numbers<[1], [0], [0], [1], [0, 0, 1, 1], [], []>} : vector<16x128xbf16>, vector<128x128xbf16>, vector<16x128xf32> -> vector<16x128xf32>
    %c0_21 = arith.constant 0 : index
    %c0_22 = arith.constant 0 : index
    %46 = vector.load %arg9[%c0_21, %c0_22] : memref<1x128xf32, #tpu.memory_space<vmem>>, vector<1x128xf32>
    %47 = vector.broadcast %46 : vector<1x128xf32> to vector<16x128xf32>
    %48 = arith.addf %45, %47 : vector<16x128xf32>
    %c0_23 = arith.constant 0 : index
    %c0_24 = arith.constant 0 : index
    %49 = vector.load %arg10[%c0_23, %c0_24] : memref<16x128xf32, #tpu.memory_space<vmem>>, vector<16x128xf32>
    tpu.vector_store %arg10[%c0_23, %c0_24], %48 {strides = array<i32>} : memref<16x128xf32, #tpu.memory_space<vmem>>, vector<16x128xf32>,
    return
  }
  func.func @transform_0(%arg0: i32) -> (i32, i32) {
    %c0_i32 = arith.constant 0 : i32
    %c0_i32_0 = arith.constant 0 : i32
    return %arg0, %c0_i32 : i32, i32
  }
  func.func @transform_1(%arg0: i32) -> (i32, i32) {
    %c0_i32 = arith.constant 0 : i32
    %c0_i32_0 = arith.constant 0 : i32
    %c0_i32_1 = arith.constant 0 : i32
    return %c0_i32, %c0_i32_0 : i32, i32
  }
  func.func @transform_2(%arg0: i32) -> (i32, i32) {
    %c0_i32 = arith.constant 0 : i32
    %c0_i32_0 = arith.constant 0 : i32
    %c0_i32_1 = arith.constant 0 : i32
    return %c0_i32, %c0_i32_0 : i32, i32
  }
  func.func @transform_3(%arg0: i32) -> (i32, i32) {
    %c0_i32 = arith.constant 0 : i32
    %c0_i32_0 = arith.constant 0 : i32
    %c0_i32_1 = arith.constant 0 : i32
    return %c0_i32, %c0_i32_0 : i32, i32
  }
  func.func @transform_4(%arg0: i32) -> (i32, i32) {
    %c0_i32 = arith.constant 0 : i32
    %c0_i32_0 = arith.constant 0 : i32
    %c0_i32_1 = arith.constant 0 : i32
    return %c0_i32, %c0_i32_0 : i32, i32
  }
  func.func @transform_5(%arg0: i32) -> (i32, i32) {
    %c0_i32 = arith.constant 0 : i32
    %c0_i32_0 = arith.constant 0 : i32
    %c0_i32_1 = arith.constant 0 : i32
    return %c0_i32, %c0_i32_0 : i32, i32
  }
  func.func @transform_6(%arg0: i32) -> (i32, i32) {
    %c0_i32 = arith.constant 0 : i32
    %c0_i32_0 = arith.constant 0 : i32
    %c0_i32_1 = arith.constant 0 : i32
    return %c0_i32, %c0_i32_0 : i32, i32
  }
  func.func @transform_7(%arg0: i32) -> (i32, i32) {
    %c0_i32 = arith.constant 0 : i32
    %c0_i32_0 = arith.constant 0 : i32
    %c0_i32_1 = arith.constant 0 : i32
    return %c0_i32, %c0_i32_0 : i32, i32
  }
  func.func @transform_8(%arg0: i32) -> (i32, i32) {
    %c0_i32 = arith.constant 0 : i32
    %c0_i32_0 = arith.constant 0 : i32
    %c0_i32_1 = arith.constant 0 : i32
    return %c0_i32, %c0_i32_0 : i32, i32
  }
  func.func @transform_9(%arg0: i32) -> (i32, i32) {
    %c0_i32 = arith.constant 0 : i32
    %c0_i32_0 = arith.constant 0 : i32
    return %arg0, %c0_i32 : i32, i32
  }
}

</mosaic_0001>

<bundles_post_ra>
// kernel: char_embedding_forward.2
= control target key start
LH: loop header
LB: loop body
LE: loop exit
PB: predicated region body
PF: predicated region fallthrough
CT: control target
= control target key end

     0   :  { %s1005_s9 = smov 0   ;;  %s1203_s0 = inlined_call_operand.vmem [shape: bf16[32,128], index: 0, kind: input, shape index: {}]   ;;  %s1204_s1 = inlined_call_operand.vmem [shape: bf16[128,896], index: 1, kind: input, shape index: {}]   ;;  %s1205_s2 = inlined_call_operand.vmem [shape: f32[32,128], index: 2, kind: output, shape index: {}]  }
   0x1 LB: > { %s762_s10 = sadd.s32 4294967295, %s985_s9   ;;  %p766_p0 = scmp.ge.s32.totalorder %s985_s9, 1  ;;  %s985_s9 = sphi %s1005_s9, %s12_s9  }
   0x2   : > { %p113_p1 = scmp.lt.s32.totalorder %s985_s9, 3 }
   0x4   : > { %p114_p2 = pnand %p766_p0, %p113_p1 }
   0x5   : > { %v870_v0 = vld [vmem:[%s1204_s1 + $0x4] ss:$28 sps:$4 sm:$0xff] (!%p114_p2)   ;;  %v987_v2 = vmov (!%p114_p2), 0   ;;  %v873_v3 = vld [vmem:[%s1204_s1 + $0xc] ss:$28 sps:$4 sm:$0xff] (!%p114_p2)   ;;  %s767_s29 = sshll.u32 (!%p114_p2), %s762_s10, 1 }
   0x6   : > { %117 = sbr.rel (%p114_p2) target bundleno = 304 (0x130), region = 28  ;;  %v872_v1 = vld [vmem:[%s1204_s1] ss:$28 sps:$4 sm:$0xff] (!%p114_p2)   ;;  %540 = vmatprep.mubr.bf16.mxu0 (!%p114_p2), %v987_v2  ;;  %583 = vmatprep.mubr.bf16.mxu1 (!%p114_p2), %v987_v2  ;;  %v875_v4 = vld [vmem:[%s1204_s1 + $0x8] ss:$28 sps:$4 sm:$0xff] (!%p114_p2)   ;;  %p136_p3 = scmp.lt.s32.totalorder (!%p114_p2), %s767_s29, 3 }
   0x7   : > { %508 = vmatprep.subr.bf16.mxu0 (!%p114_p2), %v870_v0  ;;  %v876_v5 = vld [vmem:[%s1204_s1 + $0x3c] ss:$28 sps:$4 sm:$0xff] (!%p114_p2)   ;;  %551 = vmatprep.subr.bf16.mxu1 (!%p114_p2), %v873_v3  ;;  %v879_v7 = vld [vmem:[%s1204_s1 + $0x44] ss:$28 sps:$4 sm:$0xff] (!%p114_p2)   ;;  %v882_v9 = vld [vmem:[%s1204_s1 + $0x74] ss:$28 sps:$4 sm:$0xff] (!%p114_p2)  }
   0x8   : > { %509 = vmatpush1.bf16.msra.mxu0 (!%p114_p2), %v872_v1  ;;  %v878_v6 = vld [vmem:[%s1204_s1 + $0x38] ss:$28 sps:$4 sm:$0xff] (!%p114_p2)   ;;  %552 = vmatpush1.bf16.msra.mxu1 (!%p114_p2), %v875_v4  ;;  %v881_v8 = vld [vmem:[%s1204_s1 + $0x40] ss:$28 sps:$4 sm:$0xff] (!%p114_p2)   ;;  %v884_v10 = vld [vmem:[%s1204_s1 + $0x70] ss:$28 sps:$4 sm:$0xff] (!%p114_p2)  }
   0x9   : > { %510 = vmatprep.subr.bf16.mxu0 (!%p114_p2), %v876_v5  ;;  %553 = vmatprep.subr.bf16.mxu1 (!%p114_p2), %v879_v7  ;;  %v885_v11 = vld [vmem:[%s1204_s1 + $0x7c] ss:$28 sps:$4 sm:$0xff] (!%p114_p2)   ;;  %v888_v12 = vld [vmem:[%s1204_s1 + $0xac] ss:$28 sps:$4 sm:$0xff] (!%p114_p2)   ;;  %v891_v14 = vld [vmem:[%s1204_s1 + $0xb4] ss:$28 sps:$4 sm:$0xff] (!%p114_p2)  }
   0xa   : > { %v887_v13 = vld [vmem:[%s1204_s1 + $0x78] ss:$28 sps:$4 sm:$0xff] (!%p114_p2)   ;;  %v890_v15 = vld [vmem:[%s1204_s1 + $0xa8] ss:$28 sps:$4 sm:$0xff] (!%p114_p2)   ;;  %v893_v17 = vld [vmem:[%s1204_s1 + $0xb0] ss:$28 sps:$4 sm:$0xff] (!%p114_p2)  }
   0xb   : > { %v894_v16 = vld [vmem:[%s1204_s1 + $0xe4] ss:$28 sps:$4 sm:$0xff] (!%p114_p2)   ;;  %v897_v18 = vld [vmem:[%s1204_s1 + $0xec] ss:$28 sps:$4 sm:$0xff] (!%p114_p2)   ;;  %v900_v20 = vld [vmem:[%s1204_s1 + $0x11c] ss:$28 sps:$4 sm:$0xff] (!%p114_p2)  }
   0xc   : > { %511 = vmatpush1.bf16.msra.mxu0 (!%p114_p2), %v878_v6  ;;  %554 = vmatpush1.bf16.msra.mxu1 (!%p114_p2), %v881_v8  ;;  %v896_v19 = vld [vmem:[%s1204_s1 + $0xe0] ss:$28 sps:$4 sm:$0xff] (!%p114_p2)   ;;  %v899_v21 = vld [vmem:[%s1204_s1 + $0xe8] ss:$28 sps:$4 sm:$0xff] (!%p114_p2)   ;;  %v902_v23 = vld [vmem:[%s1204_s1 + $0x118] ss:$28 sps:$4 sm:$0xff] (!%p114_p2)  }
   0xd   : > { %512 = vmatprep.subr.bf16.mxu0 %v882_v9  ;;  %555 = vmatprep.subr.bf16.mxu1 %v885_v11  ;;  %s1207_s29 = smov (!%p136_p3, %s767_s29), 3  ;;  %v903_v22 = vld [vmem:[%s1204_s1 + $0x124] ss:$28 sps:$4 sm:$0xff]   ;;  %v906_v24 = vld [vmem:[%s1204_s1 + $0x154] ss:$28 sps:$4 sm:$0xff]   ;;  %v988_v38 = vmov 0.0  }
   0xe   : > { %s768_s27 = sshll.u32 %s1207_s29, 2  ;;  %v905_v25 = vld [vmem:[%s1204_s1 + $0x120] ss:$28 sps:$4 sm:$0xff]   ;;  %v908_v27 = vld [vmem:[%s1204_s1 + $0x150] ss:$28 sps:$4 sm:$0xff]   ;;  %vm989_vm0 = vmmov 0  }
   0xf   : > { %s139_s11 = scalar_lea.vmem %s1203_s0, %s768_s27  ;;  %v909_v26 = vld [vmem:[%s1204_s1 + $0x15c] ss:$28 sps:$4 sm:$0xff]   ;;  %v912_v28 = vld [vmem:[%s1204_s1 + $0x18c] ss:$28 sps:$4 sm:$0xff]   ;;  %v915_v30 = vld [vmem:[%s1204_s1 + $0x194] ss:$28 sps:$4 sm:$0xff]  }
  0x10   : > { %513 = vmatpush1.bf16.msra.mxu0 %v884_v10  ;;  %556 = vmatpush1.bf16.msra.mxu1 %v887_v13  ;;  %v911_v29 = vld [vmem:[%s1204_s1 + $0x158] ss:$28 sps:$4 sm:$0xff]   ;;  %v914_v31 = vld [vmem:[%s1204_s1 + $0x188] ss:$28 sps:$4 sm:$0xff]   ;;  %v917_v33 = vld [vmem:[%s1204_s1 + $0x190] ss:$28 sps:$4 sm:$0xff]  }
  0x11   : > { %514 = vmatprep.subr.bf16.mxu0 %v888_v12  ;;  %557 = vmatprep.subr.bf16.mxu1 %v891_v14  ;;  %v921_v32 = vld [vmem:[%s1204_s1 + $0x14] ss:$28 sps:$4 sm:$0xff]   ;;  %v1120_v34 = vld [vmem:[%s139_s11] sm:$0xff]   ;;  %v925_v36 = vld [vmem:[%s1204_s1 + $0x4c] ss:$28 sps:$4 sm:$0xff]   ;;  %s770_s23 = sshll.u32 %s1207_s29, 3 }
  0x12   : > { %v919_v35 = vld [vmem:[%s1204_s1 + $0x10] ss:$28 sps:$4 sm:$0xff]   ;;  %v922_v37 = vld [vmem:[%s1204_s1 + $0x18] ss:$28 sps:$4 sm:$0xff]   ;;  %v923_v39 = vld [vmem:[%s1204_s1 + $0x48] ss:$28 sps:$4 sm:$0xff]   ;;  %s145_s26 = scalar_lea.vmem %s1205_s2, %s770_s23 }
  0x13   : > { %v929_v40 = vld [vmem:[%s1204_s1 + $0x84] ss:$28 sps:$4 sm:$0xff]   ;;  %v926_v41 = vld [vmem:[%s1204_s1 + $0x50] ss:$28 sps:$4 sm:$0xff]   ;;  %v933_v43 = vld [vmem:[%s1204_s1 + $0xbc] ss:$28 sps:$4 sm:$0xff]  }
  0x14   : > { %515 = vmatpush1.bf16.msra.mxu0 %v890_v15  ;;  %558 = vmatpush1.bf16.msra.mxu1 %v893_v17  ;;  %v927_v42 = vld [vmem:[%s1204_s1 + $0x80] ss:$28 sps:$4 sm:$0xff]   ;;  %v930_v44 = vld [vmem:[%s1204_s1 + $0x88] ss:$28 sps:$4 sm:$0xff]   ;;  %v931_v45 = vld [vmem:[%s1204_s1 + $0xb8] ss:$28 sps:$4 sm:$0xff]  }
  0x15   : > { %516 = vmatprep.subr.bf16.mxu0 %v894_v16  ;;  %559 = vmatprep.subr.bf16.mxu1 %v897_v18  ;;  %v937_v46 = vld [vmem:[%s1204_s1 + $0xf4] ss:$28 sps:$4 sm:$0xff]   ;;  %v934_v47 = vld [vmem:[%s1204_s1 + $0xc0] ss:$28 sps:$4 sm:$0xff]   ;;  %v941_v49 = vld [vmem:[%s1204_s1 + $0x12c] ss:$28 sps:$4 sm:$0xff]  }
  0x16   : > { %v935_v48 = vld [vmem:[%s1204_s1 + $0xf0] ss:$28 sps:$4 sm:$0xff]   ;;  %v938_v50 = vld [vmem:[%s1204_s1 + $0xf8] ss:$28 sps:$4 sm:$0xff]   ;;  %v939_v51 = vld [vmem:[%s1204_s1 + $0x128] ss:$28 sps:$4 sm:$0xff]  }
  0x17   : > { %v945_v52 = vld [vmem:[%s1204_s1 + $0x164] ss:$28 sps:$4 sm:$0xff]   ;;  %v942_v53 = vld [vmem:[%s1204_s1 + $0x130] ss:$28 sps:$4 sm:$0xff]   ;;  %v949_v55 = vld [vmem:[%s1204_s1 + $0x19c] ss:$28 sps:$4 sm:$0xff]  }
  0x18   : > { %517 = vmatpush1.bf16.msra.mxu0 %v896_v19  ;;  %560 = vmatpush1.bf16.msra.mxu1 %v899_v21  ;;  %v943_v54 = vld [vmem:[%s1204_s1 + $0x160] ss:$28 sps:$4 sm:$0xff]   ;;  %v946_v56 = vld [vmem:[%s1204_s1 + $0x168] ss:$28 sps:$4 sm:$0xff]   ;;  %v947_v57 = vld [vmem:[%s1204_s1 + $0x198] ss:$28 sps:$4 sm:$0xff]  }
  0x19   : > { %518 = vmatprep.subr.bf16.mxu0 %v900_v20  ;;  %561 = vmatprep.subr.bf16.mxu1 %v903_v22  ;;  %v950_v58 = vld [vmem:[%s1204_s1 + $0x1a0] ss:$28 sps:$4 sm:$0xff]  }
  0x1c   : > { %519 = vmatpush1.bf16.msra.mxu0 %v902_v23  ;;  %562 = vmatpush1.bf16.msra.mxu1 %v905_v25 }
  0x1d   : > { %520 = vmatprep.subr.bf16.mxu0 %v906_v24  ;;  %563 = vmatprep.subr.bf16.mxu1 %v909_v26 }
  0x20   : > { %521 = vmatpush1.bf16.msra.mxu0 %v908_v27  ;;  %564 = vmatpush1.bf16.msra.mxu1 %v911_v29 }
  0x21   : > { %522 = vmatprep.subr.bf16.mxu0 %v912_v28  ;;  %565 = vmatprep.subr.bf16.mxu1 %v915_v30 }
  0x24   : > { %523 = vmatpush1.bf16.msra.mxu0 %v914_v31  ;;  %566 = vmatpush1.bf16.msra.mxu1 %v917_v33 }
  0x25   : > { %594 = vmatprep.subr.bf16.mxu0 %v921_v32  ;;  %839 = vmatprep.subr.bf16.mxu1 %v988_v38 }
  0x27   : > { %541 = vmatmul.mubr.bf16.vlgmr.msra.gmra.mrb[0].mxu0 %v1120_v34  ;;  %584 = vmatmul.mubr.bf16.vlgmr.msra.gmra.mrb[0].mxu1 %v1120_v34 }
  0x28   : > { %595 = vmatpush1.bf16.msra.mxu0 %v919_v35  ;;  %626 = vmatprep.mubr.bf16.mxu0 %v987_v2 }
  0x29   : > { %596 = vmatprep.subr.bf16.mxu0 %v925_v36  ;;  %840 = vmatpush3.bf16.msra.mxu1 %v922_v37 }
  0x2a   : > { %855 = vmatprep.mubr.msk.bf16.mxu1 %vm989_vm0, %v988_v38  ;;  %841 = vmatprep.subr.bf16.mxu1 %v988_v38 }
  0x2c   : > { %597 = vmatpush1.bf16.msra.mxu0 %v923_v39 }
  0x2d   : > { %598 = vmatprep.subr.bf16.mxu0 %v929_v40  ;;  %842 = vmatpush3.bf16.msra.mxu1 %v926_v41 }
  0x2e   : > { %843 = vmatprep.subr.bf16.mxu1 %v988_v38 }
  0x30   : > { %599 = vmatpush1.bf16.msra.mxu0 %v927_v42 }
  0x31   : > { %600 = vmatprep.subr.bf16.mxu0 %v933_v43  ;;  %844 = vmatpush3.bf16.msra.mxu1 %v930_v44 }
  0x32   : > { %845 = vmatprep.subr.bf16.mxu1 %v988_v38 }
  0x34   : > { %601 = vmatpush1.bf16.msra.mxu0 %v931_v45 }
  0x35   : > { %602 = vmatprep.subr.bf16.mxu0 %v937_v46  ;;  %846 = vmatpush3.bf16.msra.mxu1 %v934_v47 }
  0x36   : > { %847 = vmatprep.subr.bf16.mxu1 %v988_v38 }
  0x38   : > { %603 = vmatpush1.bf16.msra.mxu0 %v935_v48 }
  0x39   : > { %604 = vmatprep.subr.bf16.mxu0 %v941_v49  ;;  %848 = vmatpush3.bf16.msra.mxu1 %v938_v50 }
  0x3a   : > { %849 = vmatprep.subr.bf16.mxu1 %v988_v38 }
  0x3c   : > { %605 = vmatpush1.bf16.msra.mxu0 %v939_v51 }
  0x3d   : > { %606 = vmatprep.subr.bf16.mxu0 %v945_v52  ;;  %850 = vmatpush3.bf16.msra.mxu1 %v942_v53 }
  0x3e   : > { %851 = vmatprep.subr.bf16.mxu1 %v988_v38 }
  0x40   : > { %607 = vmatpush1.bf16.msra.mxu0 %v943_v54 }
  0x41   : > { %608 = vmatprep.subr.bf16.mxu0 %v949_v55  ;;  %852 = vmatpush3.bf16.msra.mxu1 %v946_v56 }
  0x42   : > { %853 = vmatprep.subr.bf16.mxu1 %v988_v38 }
  0x44   : > { %609 = vmatpush1.bf16.msra.mxu0 %v947_v57 }
  0x45   : > { %854 = vmatpush3.bf16.msra.mxu1 %v950_v58 }
  0x47   : > { %627 = vmatmul.mubr.bf16.vlgmr.msra.gmra.mrb[4].mxu0 %v1120_v34 }
  0x48   : > { %856 = vmatmul.mubr.bf16.vlgmr.msra.gmra.mrb[4].mxu1 %v1120_v34 }
  0xfa   : > { %v542_v59 = vpop.f32.mrb[0].mxu0  ;;  %v585_v62 = vpop.f32.mrb[0].mxu1 }
  0xfb   : > { %951 = vtanh.f32 %v542_v59  ;;  %v544_v60 = vpop.f32.mrb[1].mxu0  ;;  %v587_v0 = vpop.f32.mrb[1].mxu1 }
  0xfc   : > { %953 = vtanh.f32 %v544_v60  ;;  %v546_v61 = vpop.f32.mrb[2].mxu0  ;;  %v589_v1 = vpop.f32.mrb[2].mxu1 }
  0xfd   : > { %955 = vtanh.f32 %v546_v61  ;;  %v548_v63 = vpop.f32.mrb[3].mxu0  ;;  %v591_v2 = vpop.f32.mrb[3].mxu1 }
  0xfe   : > { %957 = vtanh.f32 %v585_v62 }
  0xff   : > { %959 = vtanh.f32 %v548_v63 }
 0x100   : > { %961 = vtanh.f32 %v587_v0 }
 0x101   : > { %963 = vtanh.f32 %v589_v1 }
 0x102   : > { %965 = vtanh.f32 %v591_v2 }
 0x105   : > { %v952_v3 = vpop.eup %951 }
 0x106   : > { %v954_v4 = vpop.eup %953 }
 0x107   : > { %v956_v5 = vpop.eup %955  ;;  %v692_v6 = vmax.f32 %v952_v3, %v954_v4 }
 0x108   : > { %v958_v7 = vpop.eup %957 }
 0x109   : > { %v960_v8 = vpop.eup %959  ;;  %v694_v9 = vmax.f32 %v692_v6, %v958_v7 }
 0x10a   : > { %v962_v10 = vpop.eup %961  ;;  %v693_v11 = vmax.f32 %v956_v5, %v960_v8 }
 0x10b   : > { %v964_v12 = vpop.eup %963  ;;  %v696_v13 = vmax.f32 %v694_v9, %v962_v10 }
 0x10c   : > { %v695_v14 = vmax.f32 %v693_v11, %v964_v12  ;;  %v966_v15 = vpop.eup %965 }
 0x10e   : > { %v697_v16 = vmax.f32 %v695_v14, %v966_v15 }
 0x11a   : > { %v628_v17 = vpop.f32.mrb[4].mxu0 }
 0x11b   : > { %967 = vtanh.f32 %v628_v17  ;;  %v630_v18 = vpop.f32.mrb[5].mxu0  ;;  %v671_v19 = vpop.f32.mrb[4].mxu1 }
 0x11c   : > { %969 = vtanh.f32 %v630_v18  ;;  %v632_v20 = vpop.f32.mrb[6].mxu0  ;;  %v857_v21 = vpop.f32.mrb[5].mxu1 }
 0x11d   : > { %971 = vtanh.f32 %v671_v19  ;;  %v634_v22 = vpop.f32.mrb[7].mxu0  ;;  %v674_v23 = vpop.f32.mrb[6].mxu1 }
 0x11e   : > { %973 = vtanh.f32 %v632_v20  ;;  %v858_v24 = vpop.f32.mrb[7].mxu1 }
 0x11f   : > { %975 = vtanh.f32 %v634_v22 }
 0x120   : > { %977 = vtanh.f32 %v674_v23 }
 0x125   : > { %v968_v25 = vpop.eup %967 }
 0x126   : > { %v970_v26 = vpop.eup %969  ;;  %v698_v27 = vmax.f32 %v696_v13, %v968_v25 }
 0x127   : > { %v972_v28 = vpop.eup %971 }
 0x128   : > { %v974_v29 = vpop.eup %973  ;;  %v700_v30 = vmax.f32 %v698_v27, %v970_v26 }
 0x129   : > { %v976_v31 = vpop.eup %975  ;;  %v699_v32 = vmax.f32 %v697_v16, %v974_v29 }
 0x12a   : > { %v702_v33 = vmax.f32 %v700_v30, %v972_v28  ;;  %v978_v35 = vpop.eup %977 }
 0x12b   : > { %v701_v34 = vmax.f32 %v699_v32, %v976_v31 }
 0x12c   : > { %704 = vst [vmem:[%s145_s26] sm:$0xff] %v702_v33 }
 0x12d   : > { %v703_v36 = vmax.f32 %v701_v34, %v978_v35 }
 0x12f   : > { %705 = vst [vmem:[%s145_s26 + $0x8] sm:$0xff] %v703_v36 }
 0x130 PF: > { %s12_s9 = sadd.s32 1, %s985_s9  }
 0x131   : > { %p9_p4 = scmp.ge.s32.totalorder %s12_s9, 4  }
 0x133   :  { %11 = sbr.rel (!%p9_p4) target bundleno = 1 (0x1), region = 58 }

// kernel: char_embedding_forward.3
= control target key start
LH: loop header
LB: loop body
LE: loop exit
PB: predicated region body
PF: predicated region fallthrough
CT: control target
= control target key end

     0   :  { %14 = vsyncpa [#allocation3], 0  ;;  %s1468_s0 = inlined_call_operand.vmem [shape: f32[32,128], index: 0, kind: input, shape index: {}]   ;;  %s1469_s1 = inlined_call_operand.vmem [shape: f32[1,128], index: 1, kind: input, shape index: {}]   ;;  %s1470_s2 = inlined_call_operand.vmem [shape: f32[1,128], index: 2, kind: input, shape index: {}]   ;;  %s1471_s3 = inlined_call_operand.vmem [shape: bf16[128,256], index: 3, kind: input, shape index: {}]   ;;  %s1472_s4 = inlined_call_operand.vmem [shape: f32[1,256], index: 4, kind: input, shape index: {}]   ;;  %s1473_s5 = inlined_call_operand.vmem [shape: bf16[128,256], index: 5, kind: input, shape index: {}]   ;;  %s1474_s6 = inlined_call_operand.vmem [shape: f32[1,256], index: 6, kind: input, shape index: {}]   ;;  %s1475_s7 = inlined_call_operand.vmem [shape: bf16[128,128], index: 7, kind: input, shape index: {}]   ;;  %s1476_s8 = inlined_call_operand.vmem [shape: f32[1,128], index: 8, kind: input, shape index: {}]   ;;  %s1477_s9 = inlined_call_operand.hbm [shape: f32[32,128], index: 9, kind: output, shape index: {}]  }
   0x1   :  { %16 = vsyncpa [#allocation3 + $0x1], 0  ;;  %s1215_s30 = smov 0   ;;  %s1217_s10 = smov 0  }
   0x2   :  { %s1219_s11 = smov 0   ;;  %s1221_s12 = smov 0  }
   0x3 LB: > { %s1236_s13 = sadd.s32 4294967295, %s1157_s12   ;;  %s890_s14 = sadd.s32 4294967294, %s1157_s12   ;;  %s1157_s12 = sphi %s1221_s12, %s1485_s12   ;;  %s1153_s11 = sphi %s1219_s11, %s1484_s11   ;;  %s1149_s10 = sphi %s1217_s10, %s1483_s10   ;;  %s1145_s30 = sphi %s1215_s30, %s1482_s30  }
   0x4   : > { %s1240_s15 = sadd.s32 1, %s1157_s12   ;;  %s223_s16 = sadd.s32 1, %s1153_s11 }
   0x5   : > { %s220_s17 = ssub.s32 %s1157_s12, %s1240_s15  ;;  %p233_p0 = scmp.ne.s32.totalorder %s1153_s11, %s1149_s10 }
   0x6   : > { %p221_p1 = scmp.eq.s32.totalorder %s220_s17, 0  ;;  %p234_p2 = scmp.eq.s32.totalorder %s1236_s13, 1 }
   0x7   : > { %p239_p3 = scmp.ne.s32.totalorder %s1149_s10, %s1145_s30  ;;  %p240_p4 = scmp.eq.s32.totalorder %s890_s14, 1 }
   0x8   : > { %s1251_s18 = scalar_select %p221_p1, %s1153_s11, %s223_s16  }
   0x9   : > { %p1253_p5 = por %p234_p2, %p233_p0  ;;  %p1257_p6 = por %p240_p4, %p239_p3 }
   0xa   : > { %1478 = sst [smem:[#allocation5_spill]] %s1251_s18  ;;  %p893_p7 = scmp.ge.s32.totalorder %s1157_s12, 1 }
   0xb   : > { %p291_p8 = scmp.lt.s32.totalorder %s1157_s12, 3 }
   0xd   : > { %p292_p9 = pnand %p893_p7, %p291_p8 }
   0xe   : > { %v1023_v0 = vld [vmem:[%s1471_s3 + $0x4] ss:$8 sps:$4 sm:$0xff] (!%p292_p9)   ;;  %s895_s23 = sshll.u32 (!%p292_p9), %s1236_s13, 1  ;;  %v1025_v1 = vld [vmem:[%s1471_s3] ss:$8 sps:$4 sm:$0xff] (!%p292_p9)   ;;  %v1159_v2 = vmov (!%p292_p9), 0   ;;  %v374_v42 = vlaneseq (!%p292_p9) }
   0xf   : > { %295 = sbr.rel (%p292_p9) target bundleno = 777 (0x309), region = 56  ;;  %496 = vmatprep.mubr.bf16.mxu0 (!%p292_p9), %v1159_v2  ;;  %668 = vmatprep.mubr.bf16.mxu1 (!%p292_p9), %v1159_v2  ;;  %v1026_v3 = vld [vmem:[%s1471_s3 + $0x14] ss:$8 sps:$4 sm:$0xff] (!%p292_p9)   ;;  %v1028_v4 = vld [vmem:[%s1471_s3 + $0x10] ss:$8 sps:$4 sm:$0xff] (!%p292_p9)   ;;  %p328_p10 = scmp.lt.s32.totalorder (!%p292_p9), %s895_s23, 3 }
  0x10   : > { %464 = vmatprep.subr.bf16.mxu0 (!%p292_p9), %v1023_v0  ;;  %v1029_v5 = vld [vmem:[%s1471_s3 + $0x24] ss:$8 sps:$4 sm:$0xff] (!%p292_p9)   ;;  %v1031_v6 = vld [vmem:[%s1471_s3 + $0x20] ss:$8 sps:$4 sm:$0xff] (!%p292_p9)   ;;  %v1032_v7 = vld [vmem:[%s1471_s3 + $0x34] ss:$8 sps:$4 sm:$0xff] (!%p292_p9)  }
  0x11   : > { %465 = vmatpush1.bf16.msra.mxu0 (!%p292_p9), %v1025_v1  ;;  %v1034_v8 = vld [vmem:[%s1471_s3 + $0x30] ss:$8 sps:$4 sm:$0xff] (!%p292_p9)   ;;  %v1035_v9 = vld [vmem:[%s1471_s3 + $0x44] ss:$8 sps:$4 sm:$0xff] (!%p292_p9)   ;;  %v1037_v10 = vld [vmem:[%s1471_s3 + $0x40] ss:$8 sps:$4 sm:$0xff] (!%p292_p9)  }
  0x12   : > { %466 = vmatprep.subr.bf16.mxu0 (!%p292_p9), %v1026_v3  ;;  %v1038_v11 = vld [vmem:[%s1471_s3 + $0x54] ss:$8 sps:$4 sm:$0xff] (!%p292_p9)   ;;  %v1040_v12 = vld [vmem:[%s1471_s3 + $0x50] ss:$8 sps:$4 sm:$0xff] (!%p292_p9)   ;;  %v897_v15 = vld [vmem:[%s1469_s1] ss:$0 sm:$0xff] (!%p292_p9) }
  0x13   : > { %v1041_v16 = vld [vmem:[%s1471_s3 + $0x64] ss:$8 sps:$4 sm:$0xff] (!%p292_p9)   ;;  %v1043_v19 = vld [vmem:[%s1471_s3 + $0x60] ss:$8 sps:$4 sm:$0xff] (!%p292_p9)   ;;  %v1044_v21 = vld [vmem:[%s1471_s3 + $0x74] ss:$8 sps:$4 sm:$0xff] (!%p292_p9)  }
  0x14   : > { %v898_v20 = vld [vmem:[%s1470_s2] ss:$0 sm:$0xff] (!%p292_p9)  ;;  %v1046_v24 = vld [vmem:[%s1471_s3 + $0x70] ss:$8 sps:$4 sm:$0xff] (!%p292_p9)   ;;  %v1047_v26 = vld [vmem:[%s1473_s5 + $0x4] ss:$8 sps:$4 sm:$0xff] (!%p292_p9)  }
  0x15   : > { %467 = vmatpush1.bf16.msra.mxu0 (!%p292_p9), %v1028_v4  ;;  %v1049_v27 = vld [vmem:[%s1473_s5] ss:$8 sps:$4 sm:$0xff] (!%p292_p9)   ;;  %636 = vmatprep.subr.bf16.mxu1 (!%p292_p9), %v1047_v26  ;;  %v1050_v28 = vld [vmem:[%s1473_s5 + $0x14] ss:$8 sps:$4 sm:$0xff] (!%p292_p9)   ;;  %v1052_v29 = vld [vmem:[%s1473_s5 + $0x10] ss:$8 sps:$4 sm:$0xff] (!%p292_p9)  }
  0x16   : > { %s1487_s23 = smov (!%p328_p10, %s895_s23), 3  ;;  %468 = vmatprep.subr.bf16.mxu0 %v1029_v5  ;;  %637 = vmatpush1.bf16.msra.mxu1 %v1049_v27  ;;  %v1053_v30 = vld [vmem:[%s1473_s5 + $0x24] ss:$8 sps:$4 sm:$0xff]   ;;  %v1055_v31 = vld [vmem:[%s1473_s5 + $0x20] ss:$8 sps:$4 sm:$0xff]   ;;  %v1375_v43 = vshrl.u32 %v374_v42, 7 }
  0x17   : > { %s896_s27 = sshll.u32 %s1487_s23, 3  ;;  %638 = vmatprep.subr.bf16.mxu1 %v1050_v28  ;;  %v1056_v32 = vld [vmem:[%s1473_s5 + $0x34] ss:$8 sps:$4 sm:$0xff]   ;;  %v1058_v33 = vld [vmem:[%s1473_s5 + $0x30] ss:$8 sps:$4 sm:$0xff]   ;;  %vm1161_vm0 = vmmov 0  }
  0x18   : > { %s331_s18 = scalar_lea.vmem %s1468_s0, %s896_s27  ;;  %v1059_v34 = vld [vmem:[%s1473_s5 + $0x44] ss:$8 sps:$4 sm:$0xff]   ;;  %v1061_v35 = vld [vmem:[%s1473_s5 + $0x40] ss:$8 sps:$4 sm:$0xff]   ;;  %v1062_v36 = vld [vmem:[%s1473_s5 + $0x54] ss:$8 sps:$4 sm:$0xff]  }
  0x19   : > { %469 = vmatpush1.bf16.msra.mxu0 %v1031_v6  ;;  %v335_v13 = vld [vmem:[%s331_s18] sm:$0xff]  ;;  %v336_v14 = vld [vmem:[%s331_s18 + $0x8] sm:$0xff]  ;;  %v1064_v37 = vld [vmem:[%s1473_s5 + $0x50] ss:$8 sps:$4 sm:$0xff]   ;;  %v380_v44 = vsub.s32 1, %v1375_v43  ;;  %v376_v55 = vsub.s32 0, %v1375_v43 }
  0x1a   : > { %470 = vmatprep.subr.bf16.mxu0 %v1032_v7  ;;  %v344_v17 = vsub.f32 %v335_v13, %v897_v15  ;;  %v345_v18 = vsub.f32 %v336_v14, %v897_v15  ;;  %639 = vmatpush1.bf16.msra.mxu1 %v1052_v29  ;;  %v1065_v38 = vld [vmem:[%s1473_s5 + $0x64] ss:$8 sps:$4 sm:$0xff]   ;;  %v1067_v39 = vld [vmem:[%s1473_s5 + $0x60] ss:$8 sps:$4 sm:$0xff]   ;;  %v1068_v40 = vld [vmem:[%s1473_s5 + $0x74] ss:$8 sps:$4 sm:$0xff]  }
  0x1b   : > { %640 = vmatprep.subr.bf16.mxu1 %v1053_v30  ;;  %v1070_v41 = vld [vmem:[%s1473_s5 + $0x70] ss:$8 sps:$4 sm:$0xff]   ;;  %v372_v45 = vld [vmem:[%s1472_s4] sm:$0x3]  ;;  %s324_s25 = sand.u32 1, %s1149_s10   ;;  %s949_s16 = sshll.u32 %s1236_s13, 8 }
  0x1c   : > { %v1318_v22 = vmul.f32 %v898_v20, %v344_v17  ;;  %v1320_v23 = vmul.f32 %v898_v20, %v345_v18  ;;  %v381_v46 = vrot.slane %v372_v45, %v380_v44  ;;  %v377_v57 = vrot.slane %v372_v45, %v376_v55  ;;  %v1073_v13 = vld [vmem:[%s1475_s7 + $0x10] sm:$0xff]   ;;  %v1074_v14 = vld [vmem:[%s1475_s7 + $0x18] sm:$0xff]   ;;  %v1075_v15 = vld [vmem:[%s1475_s7 + $0x20] sm:$0xff]   ;;  %s894_s26 = sshll.u32 %s324_s25, 4  ;;  %s1425_s18 = scalar_lea.hbm %s1477_s9, %s949_s16 }
  0x1d   : > { %471 = vmatpush1.bf16.msra.mxu0 %v1034_v8  ;;  %v1077_v17 = vld [vmem:[%s1475_s7 + $0x30] sm:$0xff]   ;;  %v1078_v18 = vld [vmem:[%s1475_s7 + $0x38] sm:$0xff]   ;;  %s326_s14 = scalar_lea.vmem [#allocation2], %s894_s26  ;;  %s1427_s22 = scalar_lea.sflag [#allocation3], %s324_s25 }
  0x1e   : > { %472 = vmatprep.subr.bf16.mxu0 %v1035_v9  ;;  %v355_v25 = vpack.c.bf16 %v1320_v23, %v1318_v22  ;;  %641 = vmatpush1.bf16.msra.mxu1 %v1055_v31  ;;  %s828_s27 = sshll.u32 %s326_s14, 4  ;;  %s1162_s24 = smov [#allocation2]   ;;  %s1420_s27 = int_to_ptr.vmem [resolvable:$true] %s828_s27 }
  0x1f   : > { %642 = vmatprep.subr.bf16.mxu1 %v1056_v32  ;;  %s1095_s13 = scalar_lea.vmem %s1420_s27, 256  ;;  %s1099_s23 = sshll.u32 %s1162_s24, 4  ;;  %s1100_s23 = int_to_ptr.vmem [resolvable:$false] %s1099_s23 }
  0x20   : > { %p1096_p11 = scmp.ne.s32.totalorder %s1420_s27, %s1095_s13  ;;  %s1101_s26 = scalar_lea.vmem %s1100_s23, 512 }
  0x21   : > { %473 = vmatpush1.bf16.msra.mxu0 %v1037_v10  ;;  %v1071_v10 = vld [vmem:[%s1475_s7] sm:$0xff]   ;;  %p1102_p0 = scmp.lt.s32.totalorder %s1420_s27, %s1100_s23  ;;  %p1103_p1 = scmp.lt.s32.totalorder %s1101_s26, %s1095_s13 }
  0x22   : > { %474 = vmatprep.subr.bf16.mxu0 %v1038_v11  ;;  %643 = vmatpush1.bf16.msra.mxu1 %v1058_v33  ;;  %v1160_v11 = vmov 0.0   ;;  %p1097_p12 = pnand %p1096_p11, %p1253_p5 }
  0x23   : > { %644 = vmatprep.subr.bf16.mxu1 %v1059_v34  ;;  %p1104_p2 = por %p1103_p1, %p1102_p0 }
  0x24   : > { %p1098_p13 = pneg %p1097_p12 }
  0x25   : > { %475 = vmatpush1.bf16.msra.mxu0 %v1040_v12  ;;  %v1072_v12 = vld [vmem:[%s1475_s7 + $0x8] sm:$0xff]  }
  0x26   : > { %476 = vmatprep.subr.bf16.mxu0 %v1041_v16  ;;  %645 = vmatpush1.bf16.msra.mxu1 %v1061_v35  ;;  %v1076_v16 = vld [vmem:[%s1475_s7 + $0x28] sm:$0xff]   ;;  %p1105_p3 = pnand %p1104_p2, %p1098_p13 }
  0x27   : > { %646 = vmatprep.subr.bf16.mxu1 %v1062_v36 }
  0x29   : > { %477 = vmatpush1.bf16.msra.mxu0 %v1043_v19  ;;  %v544_v19 = vld [vmem:[%s1474_s6] sm:$0x3] }
  0x2a   : > { %478 = vmatprep.subr.bf16.mxu0 %v1044_v21  ;;  %647 = vmatpush1.bf16.msra.mxu1 %v1064_v37  ;;  %v553_v20 = vrot.slane %v544_v19, %v380_v44  ;;  %v549_v30 = vrot.slane %v544_v19, %v376_v55 }
  0x2b   : > { %648 = vmatprep.subr.bf16.mxu1 %v1065_v38 }
  0x2d   : > { %479 = vmatpush1.bf16.msra.mxu0 %v1046_v24 }
  0x2e   : > { %649 = vmatpush1.bf16.msra.mxu1 %v1067_v39  ;;  %959 = vmatprep.subr.bf16.mxu0 %v1160_v11 }
  0x2f   : > { %650 = vmatprep.subr.bf16.mxu1 %v1068_v40 }
  0x30   : > { %497 = vmatmul.mubr.bf16.vlgmr.msra.gmra.mrb[0].mxu0 %v355_v25 }
  0x31   : > { %960 = vmatpush3.bf16.msra.mxu0 %v1071_v10  ;;  %975 = vmatprep.mubr.msk.bf16.mxu0 %vm1161_vm0, %v1160_v11 }
  0x32   : > { %651 = vmatpush1.bf16.msra.mxu1 %v1070_v41  ;;  %961 = vmatprep.subr.bf16.mxu0 %v1160_v11 }
  0x35   : > { %962 = vmatpush3.bf16.msra.mxu0 %v1072_v12 }
  0x36   : > { %963 = vmatprep.subr.bf16.mxu0 %v1160_v11 }
  0x39   : > { %964 = vmatpush3.bf16.msra.mxu0 %v1073_v13 }
  0x3a   : > { %965 = vmatprep.subr.bf16.mxu0 %v1160_v11 }
  0x3d   : > { %966 = vmatpush3.bf16.msra.mxu0 %v1074_v14 }
  0x3e   : > { %967 = vmatprep.subr.bf16.mxu0 %v1160_v11 }
  0x41   : > { %968 = vmatpush3.bf16.msra.mxu0 %v1075_v15 }
  0x42   : > { %969 = vmatprep.subr.bf16.mxu0 %v1160_v11 }
  0x45   : > { %970 = vmatpush3.bf16.msra.mxu0 %v1076_v16 }
  0x46   : > { %971 = vmatprep.subr.bf16.mxu0 %v1160_v11 }
  0x49   : > { %972 = vmatpush3.bf16.msra.mxu0 %v1077_v17 }
  0x4a   : > { %973 = vmatprep.subr.bf16.mxu0 %v1160_v11 }
  0x4d   : > { %974 = vmatpush3.bf16.msra.mxu0 %v1078_v18 }
 0x103   : > { %v498_v47 = vpop.f32.mrb[0].mxu0 }
 0x104   : > { %v500_v48 = vpop.f32.mrb[1].mxu0  ;;  %v499_v61 = vadd.f32 %v498_v47, %v377_v57  ;;  %v935_v47 = vld [vmem:[%s1476_s8] ss:$0 sm:$0xff] }
 0x105   : > { %v501_v49 = vadd.f32 %v500_v48, %v381_v46  ;;  %v502_v50 = vpop.f32.mrb[2].mxu0 }
 0x106   : > { %v504_v51 = vpop.f32.mrb[3].mxu0  ;;  %v503_v62 = vadd.f32 %v502_v50, %v377_v57  ;;  %v507_v63 = vmax.f32 %v499_v61, 0.0 }
 0x107   : > { %v915_v52 = vmul.f32 -1.442695, %v501_v49  ;;  %v505_v53 = vadd.f32 %v504_v51, %v381_v46 }
 0x108   : > { %v508_v0 = vmax.f32 %v503_v62, 0.0  ;;  %v521_v1 = vsub.f32 %v1318_v22, %v507_v63 }
 0x109   : > { %1079 = vpow2.f32 %v915_v52  ;;  %v916_v54 = vmul.f32 -1.442695, %v505_v53 }
 0x10a   : > { %v522_v3 = vsub.f32 %v1320_v23, %v508_v0 }
 0x10b   : > { %1081 = vpow2.f32 %v916_v54 }
 0x113   : > { %v1080_v56 = vpop.eup %1079 }
 0x114   : > { %v515_v58 = vadd.f32 1.0, %v1080_v56 }
 0x115   : > { %v1082_v59 = vpop.eup %1081 }
 0x116   : > { %1083 = vrcp.f32 %v515_v58  ;;  %v516_v60 = vadd.f32 1.0, %v1082_v59 }
 0x118   : > { %1085 = vrcp.f32 %v516_v60 }
 0x120   : > { %v1084_v2 = vpop.eup %1083 }
 0x121   : > { %v523_v4 = vmul.f32 %v1084_v2, %v521_v1 }
 0x122   : > { %v1086_v5 = vpop.eup %1085 }
 0x123   : > { %v524_v6 = vmul.f32 %v1086_v5, %v522_v3  ;;  %v525_v7 = vadd.f32 %v523_v4, %v507_v63 }
 0x125   : > { %v526_v8 = vadd.f32 %v524_v6, %v508_v0 }
 0x127   : > { %v527_v9 = vpack.c.bf16 %v526_v8, %v525_v7 }
 0x129   : > { %669 = vmatmul.mubr.bf16.vlgmr.msra.gmra.mrb[0].mxu1 %v527_v9 }
 0x1fc   : > { %v670_v21 = vpop.f32.mrb[0].mxu1 }
 0x1fd   : > { %v672_v22 = vpop.f32.mrb[1].mxu1  ;;  %v671_v34 = vadd.f32 %v670_v21, %v549_v30 }
 0x1fe   : > { %v673_v23 = vadd.f32 %v672_v22, %v553_v20  ;;  %v674_v24 = vpop.f32.mrb[2].mxu1 }
 0x1ff   : > { %v676_v25 = vpop.f32.mrb[3].mxu1  ;;  %v675_v35 = vadd.f32 %v674_v24, %v549_v30  ;;  %v679_v36 = vmax.f32 %v671_v34, 0.0 }
 0x200   : > { %v933_v26 = vmul.f32 -1.442695, %v673_v23  ;;  %v677_v27 = vadd.f32 %v676_v25, %v553_v20 }
 0x201   : > { %v680_v37 = vmax.f32 %v675_v35, 0.0  ;;  %v693_v38 = vsub.f32 %v525_v7, %v679_v36 }
 0x202   : > { %1087 = vpow2.f32 %v933_v26  ;;  %v934_v28 = vmul.f32 -1.442695, %v677_v27 }
 0x203   : > { %v694_v40 = vsub.f32 %v526_v8, %v680_v37 }
 0x204   : > { %1089 = vpow2.f32 %v934_v28 }
 0x20c   : > { %v1088_v29 = vpop.eup %1087 }
 0x20d   : > { %v687_v31 = vadd.f32 1.0, %v1088_v29 }
 0x20e   : > { %v1090_v32 = vpop.eup %1089 }
 0x20f   : > { %1091 = vrcp.f32 %v687_v31  ;;  %v688_v33 = vadd.f32 1.0, %v1090_v32 }
 0x211   : > { %1093 = vrcp.f32 %v688_v33 }
 0x219   : > { %v1092_v39 = vpop.eup %1091 }
 0x21a   : > { %v695_v41 = vmul.f32 %v1092_v39, %v693_v38 }
 0x21b   : > { %v1094_v42 = vpop.eup %1093 }
 0x21c   : > { %v696_v43 = vmul.f32 %v1094_v42, %v694_v40  ;;  %v697_v44 = vadd.f32 %v695_v41, %v679_v36 }
 0x21e   : > { %v698_v45 = vadd.f32 %v696_v43, %v680_v37 }
 0x220   : > { %v699_v46 = vpack.c.bf16 %v698_v45, %v697_v44 }
 0x222   : > { %976 = vmatmul.mubr.bf16.vlgmr.msra.gmra.mrb[4].mxu0 %v699_v46 }
 0x2f5   : > { %v805_v48 = vpop.f32.mrb[4].mxu0 }
 0x2f6   : > { %v806_v49 = vadd.f32 %v935_v47, %v805_v48  ;;  %v977_v50 = vpop.f32.mrb[5].mxu0 }
 0x2f7   : > { %v808_v51 = vpop.f32.mrb[6].mxu0 }
 0x2f8   : > { %812 = vst [vmem:[%s326_s14] sm:$0xff] %v806_v49  ;;  %v809_v52 = vadd.f32 %v935_v47, %v808_v51  ;;  %v978_v53 = vpop.f32.mrb[7].mxu0 }
 0x2fa   : > { %813 = vst [vmem:[%s326_s14 + $0x8] sm:$0xff] %v809_v52 }
 0x2fb   : > { %1108 = shalt.err (!%p1105_p3)
}
 0x2fc   : > { %s1109_s25 = scalar_lea.hbm %s1425_s18, 256  ;;  %s1113_s14 = scalar_lea.hbm %s1477_s9, 512 }
 0x2fd   : > { %p1110_p4 = scmp.ne.s32.totalorder %s1425_s18, %s1109_s25  ;;  %p1114_p9 = scmp.lt.u32.totalorder %s1425_s18, %s1477_s9 }
 0x2fe   : > { %p1115_p10 = scmp.lt.u32.totalorder %s1113_s14, %s1109_s25  ;;  %p1117_p12 = scmp.lt.u32.totalorder %s1109_s25, %s1425_s18 }
 0x2ff   : > { %p1111_p7 = pnand %p1110_p4, %p1253_p5 }
 0x300   : > { %p1116_p11 = por %p1115_p10, %p1114_p9 }
 0x301   : > { %p1112_p8 = pneg %p1111_p7 }
 0x302   : > { %p1118_p13 = por %p1117_p12, %p1116_p11 }
 0x304   : > { %p1119_p0 = pnand %p1118_p13, %p1112_p8 }
 0x306   : > { %1122 = shalt.err (!%p1119_p0)
}
 0x307   : > { %s1163_s21 = smov 128   ;;  %s1164_s13 = smov 8  }
 0x308   : > { %979 = dma.vmem_to_hbm [thread:$0]  (%p1253_p5), %s1420_s27, 256, %s1425_s18, %s1427_s22, %s1163_s21, %s1163_s21, %s1164_s13  }
 0x309 PF: > { %p985_p1 = scmp.ge.s32.totalorder %s1157_s12, 2  ;;  %s843_s24 = sand.u32 1, %s1145_s30  }
 0x30a   : > { %s844_s23 = scalar_lea.sflag [#allocation3], %s843_s24 }
 0x30b   : > { %p982_p2 = pnand %p985_p1, %p1257_p6 }
 0x30d   : > { %1140 = dma.done.wait (!%p982_p2), %s844_s23, 256  }
 0x30e   : > { %1142 = vsyncadd (!%p982_p2), %s844_s23, 4294967040  ;;  %s1481_s26 = sld [smem:[#allocation5_spill]]  ;;  %p19_p3 = scmp.ge.s32.totalorder %s1240_s15, 4  }
 0x30f   : > { %s1482_s30 = smov %s1149_s10  ;;  %s1483_s10 = smov %s1153_s11 }
 0x310   : > { %s1485_s12 = smov %s1240_s15  ;;  %21 = sbr.rel (!%p19_p3) target bundleno = 3 (0x3), region = 91 }
 0x314   : > { %s1484_s11 = smov %s1481_s26 }
 0x317   :  { %849 = vsyncpa [#allocation3], 1 }
 0x318   :  { %851 = vsyncpa [#allocation3 + $0x1], 1 }

</bundles_post_ra>
